<compile_context>
chip_gen: v7x
topology: tpu7x:2x2x1
jax: 0.10.0
libtpu: 0.0.40
codegen_flags: <defaults>
</compile_context>

<pallas_src>
import jax
import jax.numpy as jnp
from jax import lax
from jax.experimental import pallas as pl
from jax.experimental.pallas import tpu as pltpu


# ----------------------------------------------------------------------------
# Tiled dense projection:  y = x @ W + b   (W stored as (in, out))
# ----------------------------------------------------------------------------
def _linear_kernel(x_ref, w_ref, b_ref, o_ref, acc_ref):
    @pl.when(pl.program_id(2) == 0)
    def _init():
        acc_ref[...] = jnp.zeros_like(acc_ref)

    acc_ref[...] += jnp.dot(x_ref[...], w_ref[...],
                            preferred_element_type=jnp.float32)

    @pl.when(pl.program_id(2) == pl.num_programs(2) - 1)
    def _finalize():
        o_ref[...] = (acc_ref[...] + b_ref[...].astype(jnp.float32)
                      ).astype(o_ref.dtype)


def _round_up(x, m):
    return ((x + m - 1) // m) * m


def _fit_tile(dim, target, align):
    """Largest tile <= target that is a multiple of `align` and divides `dim`
    (falls back to the full dim, which is always layout-legal)."""
    if dim <= target:
        return dim
    t = (target // align) * align
    while t >= align:
        if dim % t == 0:
            return t
        t -= align
    return dim


def linear(x, w, b, out_dtype, *, tm=512, tn=512, tk=1024):
    """x: (M, K) bf16, w: (K, N) bf16, b: (1, N) f32 -> (M, N) in out_dtype."""
    M, K = x.shape
    K2, N = w.shape
    assert K == K2 and b.shape == (1, N)

    # Row tile: 16-aligned (bf16 packs two rows per sublane -> avoids packed
    # relayout copies, matters most on v5e).  Ragged M is padded up to a tile
    # multiple instead of falling back to a full-M block that could blow the
    # VMEM budget on long-sequence prefills.
    row_align = 16
    tm = min(tm, _round_up(M, row_align))
    tm = max(row_align, (tm // row_align) * row_align)
    Mp = _round_up(M, tm)

    tn = _fit_tile(N, tn, 128)
    tk = _fit_tile(K, tk, 128)

    # v7x shards the "parallel" grid axes across its two TensorCores: keep at
    # least two (i, j) blocks whenever the problem allows it.
    while (Mp // tm) * (N // tn) < 2:
        if tn % 256 == 0 and N % (tn // 2) == 0:
            tn //= 2
        elif tm % (2 * row_align) == 0 and Mp % (tm // 2) == 0:
            tm //= 2
        else:
            break

    x_p = x if Mp == M else jnp.pad(x, ((0, Mp - M), (0, 0)))

    out = pl.pallas_call(
        _linear_kernel,
        out_shape=jax.ShapeDtypeStruct((Mp, N), out_dtype),
        grid=(Mp // tm, N // tn, K // tk),
        in_specs=[
            pl.BlockSpec((tm, tk), lambda i, j, k: (i, k)),
            pl.BlockSpec((tk, tn), lambda i, j, k: (k, j)),
            pl.BlockSpec((1, tn), lambda i, j, k: (0, j)),
        ],
        out_specs=pl.BlockSpec((tm, tn), lambda i, j, k: (i, j)),
        scratch_shapes=[pltpu.VMEM((tm, tn), jnp.float32)],
        compiler_params=pltpu.CompilerParams(
            dimension_semantics=("parallel", "parallel", "arbitrary"),
            vmem_limit_bytes=32 * 1024 * 1024,
        ),
    )(x_p, w, b)
    return out if Mp == M else out[:M]


# ----------------------------------------------------------------------------
# GQA attention on the fused qkv layout.
# One grid step per (batch, kv head): q block holds the whole group of G query
# heads sharing that kv head (contiguous columns of the fused qkv output), K/V
# are loaded once per group, and the output lands head-major in (B*T, E).
# ----------------------------------------------------------------------------
def _gqa_attn_kernel(q_ref, k_ref, v_ref, o_ref):
    T, GDh = q_ref.shape
    S, Dh = k_ref.shape
    G = GDh // Dh

    k = k_ref[...]                                   # (S, Dh) bf16
    v = v_ref[...]                                   # (S, Dh) bf16

    # Static (unrolled) loop over the G query heads of this group.  All slices
    # are static and 128-lane aligned -> no reshape / transpose / XLU shuffles.
    for g in range(G):
        q = q_ref[:, g * Dh:(g + 1) * Dh]            # (T, Dh) bf16, pre-scaled
        # q @ k^T without materializing a transpose (contract the last dims).
        s = lax.dot_general(q, k, (((1,), (1,)), ((), ())),
                            preferred_element_type=jnp.float32)      # (T, S) f32
        m = jnp.max(s, axis=-1, keepdims=True)
        # bf16 exp after the f32 max-subtract: ~2x EUP throughput on v6e/v7x
        # (exp is the binding unit here); unnormalized p <= 1 so bf16 is safe.
        p = jnp.exp((s - m).astype(jnp.bfloat16))                    # (T, S) bf16
        l = jnp.sum(p, axis=-1, keepdims=True, dtype=jnp.float32)    # (T, 1) f32
        o = jnp.dot(p, v, preferred_element_type=jnp.float32)        # (T, Dh) f32
        # Deferred normalization: only T*Dh multiplies (exact reciprocal).
        o = o * pl.reciprocal(l, approx=False)
        o_ref[:, g * Dh:(g + 1) * Dh] = o.astype(o_ref.dtype)


def gqa_attention(qkv, *, batch, seq, num_heads, num_kv_heads, head_dim,
                  out_dtype):
    """qkv: (B*T, E + 2*Hkv*Dh), columns laid out [q | k | v], head-major.
    Returns the attention output (B*T, E) in head-major column order (exactly
    what the output projection consumes)."""
    B, T = batch, seq
    H, Hkv, Dh = num_heads, num_kv_heads, head_dim
    G = H // Hkv
    E = H * Dh
    GDh = G * Dh
    assert qkv.shape == (B * T, E + 2 * Hkv * Dh)

    # Lane-dense / aligned layout requirements for the fused-qkv BlockSpecs.
    # TODO(synk): support head_dim not a multiple of 128 (e.g. 64) via a packed
    # layout or a per-(batch, head) grid with full-width blocks.
    assert Dh % 128 == 0, "head_dim must be a multiple of 128 for this layout"
    assert T % 8 == 0, "sequence length must be a multiple of 8"

    # TODO(synk): for very long sequences, block S with an online-softmax
    # (flash-style) accumulation to bound the f32 (T, S) score intermediate —
    # most important on v7x (64 MiB physical / 32 MiB scoped VMEM).
    return pl.pallas_call(
        _gqa_attn_kernel,
        out_shape=jax.ShapeDtypeStruct((B * T, E), out_dtype),
        grid=(B, Hkv),
        in_specs=[
            # q: the whole group of G query heads sharing kv head j.
            pl.BlockSpec((T, GDh), lambda b, j: (b, j)),
            # k / v for kv head j (after the E q-columns of the fused output).
            pl.BlockSpec((T, Dh), lambda b, j: (b, H + j)),
            pl.BlockSpec((T, Dh), lambda b, j: (b, H + Hkv + j)),
        ],
        out_specs=pl.BlockSpec((T, GDh), lambda b, j: (b, j)),
        compiler_params=pltpu.CompilerParams(
            dimension_semantics=("parallel", "parallel"),
            vmem_limit_bytes=32 * 1024 * 1024,
        ),
    )(qkv, qkv, qkv)


# ----------------------------------------------------------------------------
# Module wrapper
# ----------------------------------------------------------------------------
class MBartGQAttentionPallas:
    def __init__(self, embed_dim, num_heads, num_kv_heads, key):
        assert num_heads % num_kv_heads == 0
        assert embed_dim % num_heads == 0
        self.embed_dim = embed_dim
        self.num_heads = num_heads
        self.num_kv_heads = num_kv_heads
        self.num_kv_groups = num_heads // num_kv_heads
        self.head_dim = embed_dim // num_heads
        self.scaling = self.head_dim ** (-0.5)

        kv_dim = num_kv_heads * self.head_dim
        ks = jax.random.split(key, 8)
        init = lambda k, shape: (0.02 * jax.random.normal(k, shape)).astype(jnp.float32)
        # Master weights in f32, stored as (in, out) so kernels do x @ W.
        self.wq = init(ks[0], (embed_dim, embed_dim))
        self.bq = init(ks[1], (1, embed_dim))
        self.wk = init(ks[2], (embed_dim, kv_dim))
        self.bk = init(ks[3], (1, kv_dim))
        self.wv = init(ks[4], (embed_dim, kv_dim))
        self.bv = init(ks[5], (1, kv_dim))
        self.wo = init(ks[6], (embed_dim, embed_dim))
        self.bo = init(ks[7], (1, embed_dim))

        # Fused QKV weights with the 1/sqrt(Dh) scaling folded into the q part.
        # bf16 copies feed the MXU; biases stay f32 (added on the f32 accumulator).
        self.w_qkv = jnp.concatenate(
            [self.wq * self.scaling, self.wk, self.wv], axis=1).astype(jnp.bfloat16)
        self.b_qkv = jnp.concatenate(
            [self.bq * self.scaling, self.bk, self.bv], axis=1).astype(jnp.float32)
        self.wo_bf16 = self.wo.astype(jnp.bfloat16)

    def __call__(self, hidden_states):
        B, T, E = hidden_states.shape
        x2d = hidden_states.reshape(B * T, E).astype(jnp.bfloat16)

        # One fused GEMM for q|k|v  (scaling already folded into w_qkv).
        qkv = linear(x2d, self.w_qkv, self.b_qkv, jnp.bfloat16)     # (B*T, E+2*kv)

        # Attention directly on the fused layout; no slices / transposes.
        attn = gqa_attention(qkv, batch=B, seq=T,
                             num_heads=self.num_heads,
                             num_kv_heads=self.num_kv_heads,
                             head_dim=self.head_dim,
                             out_dtype=jnp.bfloat16)                # (B*T, E)

        # Output projection; final result kept f32 to match the module output.
        out = linear(attn, self.wo_bf16, self.bo, jnp.float32)      # (B*T, E)
        return out.reshape(B, T, E)

    # Pure-JAX f32 reference for correctness checking.
    def reference(self, hidden_states):
        B, T, E = hidden_states.shape
        H, Hkv, Dh = self.num_heads, self.num_kv_heads, self.head_dim
        x2d = hidden_states.reshape(B * T, E)
        q = (x2d @ self.wq + self.bq) * self.scaling
        k = x2d @ self.wk + self.bk
        v = x2d @ self.wv + self.bv
        q = q.reshape(B, T, H, Dh).transpose(0, 2, 1, 3)
        k = k.reshape(B, T, Hkv, Dh).transpose(0, 2, 1, 3)
        v = v.reshape(B, T, Hkv, Dh).transpose(0, 2, 1, 3)
        k = jnp.repeat(k, self.num_kv_groups, axis=1)
        v = jnp.repeat(v, self.num_kv_groups, axis=1)
        s = jnp.einsum("bhtd,bhsd->bhts", q, k)
        p = jax.nn.softmax(s, axis=-1)
        o = jnp.einsum("bhts,bhsd->bhtd", p, v)
        o = o.transpose(0, 2, 1, 3).reshape(B * T, E)
        return (o @ self.wo + self.bo).reshape(B, T, E)


if __name__ == "__main__":
    key = jax.random.PRNGKey(0)
    k_param, k_x = jax.random.split(key)

    # Small but TPU-layout-friendly shapes: head_dim = 128 (lane aligned),
    # seq multiple of 8, two query heads per kv head (GQA group size 2).
    batch, seq = 2, 16
    embed_dim, num_heads, num_kv_heads = 512, 4, 2

    module = MBartGQAttentionPallas(embed_dim, num_heads, num_kv_heads, k_param)
    hidden_states = jax.random.normal(k_x, (batch, seq, embed_dim),
                                      dtype=jnp.float32)

    out = jax.block_until_ready(module(hidden_states))
    ref = module.reference(hidden_states)

    assert out.shape == (batch, seq, embed_dim)
    max_err = float(jnp.max(jnp.abs(out - ref)))
    # bf16 MXU inputs + bf16 exp -> slightly looser tolerance than pure f32.
    assert jnp.allclose(out, ref, atol=2e-2, rtol=2e-2), f"max abs err {max_err}"

    print("KERNEL_OK")
</pallas_src>

<mosaic_0001>
module attributes {stable_mosaic.version = 11 : i64} {
  func.func @_linear_kernel(%arg0: i32, %arg1: i32, %arg2: i32, %arg3: memref<32x512xbf16, #tpu.memory_space<vmem>>, %arg4: memref<512x512xbf16, #tpu.memory_space<vmem>>, %arg5: memref<1x512xf32, #tpu.memory_space<vmem>>, %arg6: memref<32x512xbf16, #tpu.memory_space<vmem>>, %arg7: memref<32x512xf32, #tpu.memory_space<vmem>>) attributes {dimension_semantics = [#tpu.dimension_semantics<parallel>, #tpu.dimension_semantics<parallel>, #tpu.dimension_semantics<arbitrary>], iteration_bounds = array<i64: 1, 2, 1>, scalar_prefetch = 0 : i64, scratch_operands = 1 : i64, tpu.core_type = #tpu.core_type<tc>, window_params = [{transform_indices = @transform_0, window_bounds = array<i64: 32, 512>}, {transform_indices = @transform_1, window_bounds = array<i64: 512, 512>}, {transform_indices = @transform_2, window_bounds = array<i64: 1, 512>}, {transform_indices = @transform_3, window_bounds = array<i64: 32, 512>}]} {
    %c0_i32 = arith.constant 0 : i32
    %0 = arith.cmpi eq, %arg2, %c0_i32 : i32
    %1 = arith.extui %0 : i1 to i32
    %c0_i32_0 = arith.constant 0 : i32
    %2 = arith.cmpi ne, %1, %c0_i32_0 : i32
    scf.if %2 {
      %cst_10 = arith.constant 0.000000e+00 : f32
      %12 = vector.broadcast %cst_10 : f32 to vector<32x512xf32>
      %c0_11 = arith.constant 0 : index
      %c0_12 = arith.constant 0 : index
      %13 = vector.load %arg7[%c0_11, %c0_12] : memref<32x512xf32, #tpu.memory_space<vmem>>, vector<32x512xf32>
      tpu.vector_store %arg7[%c0_11, %c0_12], %12 {strides = array<i32>} : memref<32x512xf32, #tpu.memory_space<vmem>>, vector<32x512xf32>,
    } else {
    }
    %c0 = arith.constant 0 : index
    %c0_1 = arith.constant 0 : index
    %3 = vector.load %arg7[%c0, %c0_1] : memref<32x512xf32, #tpu.memory_space<vmem>>, vector<32x512xf32>
    %c0_2 = arith.constant 0 : index
    %c0_3 = arith.constant 0 : index
    %4 = vector.load %arg3[%c0_2, %c0_3] : memref<32x512xbf16, #tpu.memory_space<vmem>>, vector<32x512xbf16>
    %c0_4 = arith.constant 0 : index
    %c0_5 = arith.constant 0 : index
    %5 = vector.load %arg4[%c0_4, %c0_5] : memref<512x512xbf16, #tpu.memory_space<vmem>>, vector<512x512xbf16>
    %cst = arith.constant dense<0.000000e+00> : vector<32x512xf32>
    %6 = tpu.matmul %4, %5, %cst {dimension_numbers = #tpu.dot_dimension_numbers<[1], [0], [0], [1], [0, 0, 1, 1], [], []>} : vector<32x512xbf16>, vector<512x512xbf16>, vector<32x512xf32> -> vector<32x512xf32>
    %7 = arith.addf %3, %6 : vector<32x512xf32>
    %c0_6 = arith.constant 0 : index
    %c0_7 = arith.constant 0 : index
    %8 = vector.load %arg7[%c0_6, %c0_7] : memref<32x512xf32, #tpu.memory_space<vmem>>, vector<32x512xf32>
    tpu.vector_store %arg7[%c0_6, %c0_7], %7 {strides = array<i32>} : memref<32x512xf32, #tpu.memory_space<vmem>>, vector<32x512xf32>,
    %c0_i32_8 = arith.constant 0 : i32
    %9 = arith.cmpi eq, %arg2, %c0_i32_8 : i32
    %10 = arith.extui %9 : i1 to i32
    %c0_i32_9 = arith.constant 0 : i32
    %11 = arith.cmpi ne, %10, %c0_i32_9 : i32
    scf.if %11 {
      %c0_10 = arith.constant 0 : index
      %c0_11 = arith.constant 0 : index
      %12 = vector.load %arg7[%c0_10, %c0_11] : memref<32x512xf32, #tpu.memory_space<vmem>>, vector<32x512xf32>
      %c0_12 = arith.constant 0 : index
      %c0_13 = arith.constant 0 : index
      %13 = vector.load %arg5[%c0_12, %c0_13] : memref<1x512xf32, #tpu.memory_space<vmem>>, vector<1x512xf32>
      %14 = vector.broadcast %13 : vector<1x512xf32> to vector<32x512xf32>
      %15 = arith.addf %12, %14 : vector<32x512xf32>
      %16 = arith.truncf %15 : vector<32x512xf32> to vector<32x512xbf16>
      %c0_14 = arith.constant 0 : index
      %c0_15 = arith.constant 0 : index
      %17 = vector.load %arg6[%c0_14, %c0_15] : memref<32x512xbf16, #tpu.memory_space<vmem>>, vector<32x512xbf16>
      tpu.vector_store %arg6[%c0_14, %c0_15], %16 {strides = array<i32>} : memref<32x512xbf16, #tpu.memory_space<vmem>>, vector<32x512xbf16>,
    } else {
    }
    return
  }
  func.func @transform_0(%arg0: i32, %arg1: i32, %arg2: i32) -> (i32, i32) {
    %c0_i32 = arith.constant 0 : i32
    return %arg0, %arg2 : i32, i32
  }
  func.func @transform_1(%arg0: i32, %arg1: i32, %arg2: i32) -> (i32, i32) {
    %c0_i32 = arith.constant 0 : i32
    return %arg2, %arg1 : i32, i32
  }
  func.func @transform_2(%arg0: i32, %arg1: i32, %arg2: i32) -> (i32, i32) {
    %c0_i32 = arith.constant 0 : i32
    %c0_i32_0 = arith.constant 0 : i32
    return %c0_i32, %arg1 : i32, i32
  }
  func.func @transform_3(%arg0: i32, %arg1: i32, %arg2: i32) -> (i32, i32) {
    %c0_i32 = arith.constant 0 : i32
    return %arg0, %arg1 : i32, i32
  }
}

</mosaic_0001>

<bundles_post_ra>
// kernel: tpu_custom_call.1
= control target key start
LH: loop header
LB: loop body
LE: loop exit
PB: predicated region body
PF: predicated region fallthrough
CT: control target
= control target key end

     0   :  { %s2729_s0 = inlined_call_operand.hbm [shape: bf16[32,512], index: 0, kind: input, shape index: {}]   ;;  %s2730_s1 = inlined_call_operand.hbm [shape: bf16[512,1024], index: 1, kind: input, shape index: {}]   ;;  %s2731_s2 = inlined_call_operand.hbm [shape: f32[1,1024], index: 2, kind: input, shape index: {}]   ;;  %s2732_s3 = inlined_call_operand.hbm [shape: bf16[32,1024], index: 3, kind: output, shape index: {}]  }
   0x1   :  { %2740 = sst [smem:[#allocation13_spill]] %s2730_s1 }
   0x2   :  { %8 = vsyncpa [#allocation4], 0 }
   0x3   :  { %9 = vsyncpa [#allocation7], 0 }
   0x4   :  { %11 = vsyncpa [#allocation7 + $0x1], 0 }
   0x5   :  { %12 = vsyncpa [#allocation5], 0 }
   0x6   :  { %14 = vsyncpa [#allocation5 + $0x1], 0  ;;  %s2324_s12 = smov 0   ;;  %s2326_s13 = smov 0  }
   0x7   :  { %s2328_s14 = smov 0   ;;  %s2330_s15 = smov 0  }
   0x8   :  { %s2332_s16 = smov 0   ;;  %s2334_s17 = smov 0  }
   0x9 LB: > { %s35_s18 = sadd.s32 1, %s2288_s16  ;;  %s76_s19 = sadd.s32 1, %s2280_s14  ;;  %s2292_s17 = sphi %s2334_s17, %s20_s17   ;;  %s2288_s16 = sphi %s2332_s16, %s2763_s16   ;;  %s2284_s15 = sphi %s2330_s15, %s2762_s15   ;;  %s2280_s14 = sphi %s2328_s14, %s2761_s14   ;;  %s2276_s13 = sphi %s2326_s13, %s2760_s13   ;;  %s2272_s12 = sphi %s2324_s12, %s2759_s12  }
   0xa   : > { %p37_p0 = scmp.ge.s32.totalorder %s35_s18, 2  ;;  %p83_p1 = scmp.ne.s32.totalorder %s2280_s14, %s2276_s13 }
   0xb   : > { %p84_p2 = scmp.eq.s32.totalorder %s2292_s17, 0  ;;  %p1856_p6 = scmp.lt.s32.totalorder %s2292_s17, 2 }
   0xc   : > { %s2765_s18 = smov (%p37_p0, %s35_s18), 0  ;;  %s186_s22 = sand.u32 1, %s2292_s17  }
   0xd   : > { %p2364_p3 = por %p84_p2, %p83_p1  ;;  %s72_s21 = ssub.s32 %s2288_s16, %s2765_s18 }
   0xe   : > { %p74_p5 = scmp.eq.s32.totalorder %s72_s21, 0  ;;  %s188_s23 = sand.u32 1, %s2280_s14  }
   0xf   : > { %s1643_s25 = sshll.u32 %s188_s23, 10  ;;  %s1803_s26 = sshll.u32 %s2288_s16, 8 }
  0x10   : > { %s2375_s24 = scalar_select %p74_p5, %s2280_s14, %s76_s19  }
  0x11   : > { %s2742_s1 = sld [smem:[#allocation13_spill]]  ;;  %s190_s30 = scalar_lea.vmem [#allocation6], %s1643_s25 }
  0x12   : > { %s200_s4 = sshll.u32 %s190_s30, 4  ;;  %p2389_p7 = pnand %p1856_p6, %p2364_p3  ;;  %s2385_s4 = int_to_ptr.vmem [resolvable:$true] %s200_s4 }
  0x13   : > { %s2393_s6 = scalar_lea.sflag [#allocation7], %s186_s22 }
  0x14   : > { %p2120_p9 = pneg %p2389_p7 }
  0x17   : > { %s2383_s29 = scalar_lea.hbm %s2742_s1, %s1803_s26  ;;  %s2123_s10 = scalar_lea.hbm %s2742_s1, 32768 }
  0x18   : > { %s2118_s7 = scalar_lea.hbm %s2383_s29, 16384  ;;  %p2124_p12 = scmp.lt.u32.totalorder %s2383_s29, %s2742_s1 }
  0x19   : > { %p2119_p8 = scmp.ne.s32.totalorder %s2383_s29, %s2118_s7  ;;  %p2125_p13 = scmp.lt.u32.totalorder %s2123_s10, %s2118_s7 }
  0x1a   : > { %p2127_p2 = scmp.lt.u32.totalorder %s2118_s7, %s2383_s29 }
  0x1b   : > { %p2121_p10 = pnand %p2120_p9, %p2119_p8  ;;  %p2126_p0 = por %p2125_p13, %p2124_p12 }
  0x1d   : > { %p2122_p11 = pneg %p2121_p10  ;;  %p2128_p3 = por %p2127_p2, %p2126_p0 }
  0x1f   : > { %p2129_p5 = pnand %p2128_p3, %p2122_p11 }
  0x21   : > { %2132 = shalt.err (!%p2129_p5)
}
  0x22   : > { %s2133_s20 = scalar_lea.vmem %s2385_s4, 16384  ;;  %s2294_s21 = smov [#allocation6]  }
  0x23   : > { %p2134_p6 = scmp.ne.s32.totalorder %s2385_s4, %s2133_s20  ;;  %s2138_s22 = sshll.u32 %s2294_s21, 4  ;;  %s2139_s22 = int_to_ptr.vmem [resolvable:$false] %s2138_s22 }
  0x24   : > { %s2140_s25 = scalar_lea.vmem %s2139_s22, 32768  ;;  %p2141_p4 = scmp.lt.s32.totalorder %s2385_s4, %s2139_s22 }
  0x25   : > { %p2136_p8 = pnand %p2134_p6, %p2120_p9  ;;  %p2142_p12 = scmp.lt.s32.totalorder %s2140_s25, %s2133_s20 }
  0x27   : > { %p2137_p10 = pneg %p2136_p8  ;;  %p2143_p13 = por %p2142_p12, %p2141_p4 }
  0x29   : > { %p2144_p0 = pnand %p2143_p13, %p2137_p10 }
  0x2b   : > { %2147 = shalt.err (!%p2144_p0)
}
  0x2c   : > { %s2295_s26 = smov 512   ;;  %s2733_s27 = smov 256  }
  0x2d   : > { %s2734_s28 = smov 16   ;;  %s2424_s30 = sadd.s32 4294967295, %s2292_s17  }
  0x2e   : > { %1847 = dma.hbm_to_vmem [thread:$0]  (!%p2389_p7), %s2383_s29, 16384, %s2385_s4, %s2393_s6, %s2295_s26, %s2733_s27, %s2734_s28  }
  0x2f   : > { %s1639_s7 = sadd.s32 4294967294, %s2292_s17   ;;  %p89_p4 = scmp.ne.s32.totalorder %s2276_s13, %s2272_s12 }
  0x30   : > { %p2735_p11 = scmp.eq.s32.totalorder %s2424_s30, 0  ;;  %p141_p2 = scmp.eq.s32.totalorder %s2424_s30, 1 }
  0x31   : > { %p147_p3 = scmp.eq.s32.totalorder %s1639_s7, 1  ;;  %p1640_p6 = scmp.ge.s32.totalorder %s2292_s17, 1 }
  0x32   : > { %p2433_p5 = por %p2735_p11, %p89_p4  ;;  %p2441_p8 = por %p141_p2, %p83_p1 }
  0x33   : > { %p2445_p10 = por %p147_p3, %p89_p4  ;;  %p154_p12 = scmp.lt.s32.totalorder %s2292_s17, 3 }
  0x34   : > { %s2744_s8 = scalar_select %p2433_p5, 1, 0 }
  0x35   : > { %s2745_s29 = scalar_select %p2441_p8, 1, 0 }
  0x36   : > { %s2746_s4 = scalar_select %p2445_p10, 1, 0 }
  0x37   : > { %s1646_s9 = sshll.u32 %s188_s23, 2  ;;  %p2452_p13 = pnand %p1640_p6, %p154_p12 }
  0x38   : > { %s2298_s11 = smov [#allocation3]   ;;  %s1804_s20 = sshll.u32 %s2288_s16, 6 }
  0x39   : > { %s2747_s10 = scalar_select %p2452_p13, 1, 0 }
  0x3a   : > { %s172_s19 = sshll.u32 %s2298_s11, 4  ;;  %p1840_p1 = pneg %p2452_p13  ;;  %s2456_s19 = int_to_ptr.vmem [resolvable:$true] %s172_s19 }
  0x3b   : > { %s2464_s25 = scalar_lea.hbm %s2731_s2, %s1804_s20  ;;  %s214_s23 = scalar_lea.vmem [#allocation8], %s1646_s9 }
  0x3c   : > { %s222_s26 = sshll.u32 %s214_s23, 4  ;;  %p2468_p0 = pnand %p1840_p1, %p2735_p11  ;;  %s223_s26 = int_to_ptr.vmem [resolvable:$true] %s222_s26 }
  0x3d   : > { %s2148_s11 = scalar_lea.hbm %s2464_s25, 64  ;;  %s2153_s22 = scalar_lea.hbm %s2731_s2, 128 }
  0x3e   : > { %s2748_s7 = scalar_select %p2468_p0, 1, 0 }
  0x3f   : > { %p2149_p4 = scmp.ne.s32.totalorder %s2464_s25, %s2148_s11  ;;  %p2154_p6 = scmp.lt.u32.totalorder %s2464_s25, %s2731_s2 }
  0x40   : > { %p2155_p12 = scmp.lt.u32.totalorder %s2153_s22, %s2148_s11  ;;  %p2157_p11 = scmp.lt.u32.totalorder %s2148_s11, %s2464_s25 }
  0x41   : > { %p2151_p2 = pnand %p2149_p4, %p2120_p9 }
  0x42   : > { %p2156_p1 = por %p2155_p12, %p2154_p6 }
  0x43   : > { %p2152_p3 = pneg %p2151_p2 }
  0x44   : > { %p2158_p10 = por %p2157_p11, %p2156_p1 }
  0x46   : > { %p2159_p8 = pnand %p2158_p10, %p2152_p3 }
  0x48   : > { %2162 = shalt.err (!%p2159_p8)
}
  0x49   : > { %s2163_s9 = scalar_lea.vmem %s223_s26, 64  ;;  %s2299_s23 = smov [#allocation8]  }
  0x4a   : > { %p2164_p5 = scmp.ne.s32.totalorder %s223_s26, %s2163_s9  ;;  %s2168_s20 = sshll.u32 %s2299_s23, 4  ;;  %s2169_s20 = int_to_ptr.vmem [resolvable:$false] %s2168_s20 }
  0x4b   : > { %s2170_s21 = scalar_lea.vmem %s2169_s20, 128  ;;  %p2171_p13 = scmp.lt.s32.totalorder %s223_s26, %s2169_s20 }
  0x4c   : > { %p2166_p4 = pnand %p2164_p5, %p2120_p9  ;;  %p2172_p0 = scmp.lt.s32.totalorder %s2170_s21, %s2163_s9 }
  0x4e   : > { %p2167_p2 = pneg %p2166_p4  ;;  %p2173_p6 = por %p2172_p0, %p2171_p13 }
  0x50   : > { %p2174_p12 = pnand %p2173_p6, %p2167_p2 }
  0x52   : > { %2177 = shalt.err (!%p2174_p12)
}
  0x53   : > { %1850 = dma.hbm_to_vmem [thread:$0]  (!%p2389_p7), %s2464_s25, 64, %s223_s26, %s2393_s6  }
  0x54   : > { %s2178_s11 = scalar_lea.hbm %s2729_s0, 1024  ;;  %p2749_p11 = scmp.ne.s32.totalorder %s2748_s7, 0 }
  0x55   : > { %p2179_p9 = scmp.ne.s32.totalorder %s2729_s0, %s2178_s11  ;;  %p2185_p13 = scmp.lt.u32.totalorder %s2178_s11, %s2729_s0 }
  0x56   : > { %p2180_p5 = pneg %p2749_p11 }
  0x58   : > { %p2181_p8 = pnand %p2180_p5, %p2179_p9 }
  0x5a   : > { %p2182_p10 = pneg %p2181_p8 }
  0x5c   : > { %p2187_p0 = pnand %p2185_p13, %p2182_p10 }
  0x5e   : > { %2190 = shalt.err (!%p2187_p0)
}
  0x5f   : > { %s2191_s5 = scalar_lea.vmem %s2456_s19, 1024  ;;  %p2199_p4 = scmp.lt.s32.totalorder %s2456_s19, %s2456_s19 }
  0x60   : > { %p2192_p7 = scmp.ne.s32.totalorder %s2456_s19, %s2191_s5  ;;  %p2200_p2 = scmp.lt.s32.totalorder %s2191_s5, %s2191_s5 }
  0x62   : > { %p2194_p3 = pnand %p2192_p7, %p2180_p5  ;;  %p2201_p6 = por %p2200_p2, %p2199_p4 }
  0x64   : > { %p2195_p1 = pneg %p2194_p3 }
  0x66   : > { %p2202_p12 = pnand %p2201_p6, %p2195_p1 }
  0x68   : > { %2205 = shalt.err (!%p2202_p12)
}
  0x69   : > { %s2750_s1 = smov 16   ;;  %s2751_s6 = smov 256  }
  0x6a   : > { %1843 = dma.hbm_to_vmem [thread:$0]  (!%p2749_p11), %s2729_s0, 1024, %s2456_s19, [#allocation4], %s2751_s6, %s2751_s6, %s2750_s1  }
  0x6b   : > { %p2752_p9 = scmp.ne.s32.totalorder %s2747_s10, 0 }
  0x6c   : > { %p2753_p5 = scmp.eq.s32.totalorder (!%p2752_p9), %s2424_s30, 0 }
  0x6d   : > { %231 = sbr.rel (%p2752_p9) target bundleno = 494 (0x1ee), region = 32 }
  0x74   : > { %2259 = dma.done.wait (%p2753_p5), [#allocation4], 1024   ;;  %p2754_p8 = pmov %p2753_p5 }
  0x75   : > { %s237_s7 = sand.u32 1, %s2424_s30   ;;  %s2524_s20 = sand.u32 1, %s2276_s13  }
  0x76   : > { %2261 = vsyncadd (%p2754_p8), [#allocation4], 4294966272  ;;  %s1651_s21 = sshll.u32 %s2524_s20, 10  ;;  %s238_s27 = scalar_lea.sflag [#allocation7], %s237_s7 }
  0x77   : > { %s2527_s28 = scalar_lea.vmem [#allocation6], %s1651_s21  ;;  %p2755_p11 = scmp.ne.s32.totalorder %s2744_s8, 0 }
  0x79   : > { %2263 = dma.done.wait (%p2755_p11), %s238_s27, 16448  }
  0x7a   : > { %2265 = vsyncadd (%p2755_p11), %s238_s27, 4294950848  ;;  %v1914_v0 = vld [vmem:[%s2527_s28 + $0x4] ss:$16 sps:$4 sm:$0xff]   ;;  %v1916_v1 = vld [vmem:[%s2527_s28 + $0xc] ss:$16 sps:$4 sm:$0xff]   ;;  %s1652_s30 = sshll.u32 %s2524_s20, 2 }
  0x7b   : > { %1137 = vmatprep.subr.bf16.mxu0 %v1914_v0  ;;  %v1918_v2 = vld [vmem:[%s2527_s28] ss:$16 sps:$4 sm:$0xff]   ;;  %v1919_v3 = vld [vmem:[%s2527_s28 + $0x8] ss:$16 sps:$4 sm:$0xff]   ;;  %1243 = vmatprep.subr.bf16.mxu1 %v1916_v1  ;;  %v1920_v4 = vld [vmem:[%s2527_s28 + $0x24] ss:$16 sps:$4 sm:$0xff]  }
  0x7c   : > { %1138 = vmatpush1.bf16.msra.mxu0 %v1918_v2  ;;  %1244 = vmatpush1.bf16.msra.mxu1 %v1919_v3  ;;  %v1922_v5 = vld [vmem:[%s2527_s28 + $0x2c] ss:$16 sps:$4 sm:$0xff]   ;;  %v1924_v6 = vld [vmem:[%s2527_s28 + $0x20] ss:$16 sps:$4 sm:$0xff]   ;;  %v1925_v7 = vld [vmem:[%s2527_s28 + $0x28] ss:$16 sps:$4 sm:$0xff]  }
  0x7d   : > { %1139 = vmatprep.subr.bf16.mxu0 %v1920_v4  ;;  %1245 = vmatprep.subr.bf16.mxu1 %v1922_v5  ;;  %v1926_v8 = vld [vmem:[%s2527_s28 + $0x44] ss:$16 sps:$4 sm:$0xff]   ;;  %v1928_v9 = vld [vmem:[%s2527_s28 + $0x4c] ss:$16 sps:$4 sm:$0xff]   ;;  %v1930_v10 = vld [vmem:[%s2527_s28 + $0x40] ss:$16 sps:$4 sm:$0xff]  }
  0x7e   : > { %v1931_v11 = vld [vmem:[%s2527_s28 + $0x48] ss:$16 sps:$4 sm:$0xff]   ;;  %v1932_v12 = vld [vmem:[%s2527_s28 + $0x64] ss:$16 sps:$4 sm:$0xff]   ;;  %v1934_v13 = vld [vmem:[%s2527_s28 + $0x6c] ss:$16 sps:$4 sm:$0xff]  }
  0x7f   : > { %v1936_v14 = vld [vmem:[%s2527_s28 + $0x60] ss:$16 sps:$4 sm:$0xff]   ;;  %v1937_v15 = vld [vmem:[%s2527_s28 + $0x68] ss:$16 sps:$4 sm:$0xff]   ;;  %v1938_v16 = vld [vmem:[%s2527_s28 + $0x84] ss:$16 sps:$4 sm:$0xff]  }
  0x80   : > { %1140 = vmatpush1.bf16.msra.mxu0 %v1924_v6  ;;  %1246 = vmatpush1.bf16.msra.mxu1 %v1925_v7  ;;  %v1940_v17 = vld [vmem:[%s2527_s28 + $0x8c] ss:$16 sps:$4 sm:$0xff]   ;;  %v1942_v18 = vld [vmem:[%s2527_s28 + $0x80] ss:$16 sps:$4 sm:$0xff]   ;;  %v1943_v19 = vld [vmem:[%s2527_s28 + $0x88] ss:$16 sps:$4 sm:$0xff]  }
  0x81   : > { %1141 = vmatprep.subr.bf16.mxu0 %v1926_v8  ;;  %1247 = vmatprep.subr.bf16.mxu1 %v1928_v9  ;;  %v1944_v20 = vld [vmem:[%s2527_s28 + $0xa4] ss:$16 sps:$4 sm:$0xff]   ;;  %v1946_v21 = vld [vmem:[%s2527_s28 + $0xac] ss:$16 sps:$4 sm:$0xff]   ;;  %v1948_v22 = vld [vmem:[%s2527_s28 + $0xa0] ss:$16 sps:$4 sm:$0xff]  }
  0x82   : > { %v1949_v23 = vld [vmem:[%s2527_s28 + $0xa8] ss:$16 sps:$4 sm:$0xff]   ;;  %v1950_v24 = vld [vmem:[%s2527_s28 + $0xc4] ss:$16 sps:$4 sm:$0xff]   ;;  %v1952_v25 = vld [vmem:[%s2527_s28 + $0xcc] ss:$16 sps:$4 sm:$0xff]  }
  0x83   : > { %v1954_v26 = vld [vmem:[%s2527_s28 + $0xc0] ss:$16 sps:$4 sm:$0xff]   ;;  %v1955_v27 = vld [vmem:[%s2527_s28 + $0xc8] ss:$16 sps:$4 sm:$0xff]   ;;  %v1956_v28 = vld [vmem:[%s2527_s28 + $0xe4] ss:$16 sps:$4 sm:$0xff]  }
  0x84   : > { %1142 = vmatpush1.bf16.msra.mxu0 %v1930_v10  ;;  %1248 = vmatpush1.bf16.msra.mxu1 %v1931_v11  ;;  %v1958_v29 = vld [vmem:[%s2527_s28 + $0xec] ss:$16 sps:$4 sm:$0xff]   ;;  %v1960_v30 = vld [vmem:[%s2527_s28 + $0xe0] ss:$16 sps:$4 sm:$0xff]   ;;  %v1961_v31 = vld [vmem:[%s2527_s28 + $0xe8] ss:$16 sps:$4 sm:$0xff]  }
  0x85   : > { %1143 = vmatprep.subr.bf16.mxu0 %v1932_v12  ;;  %1249 = vmatprep.subr.bf16.mxu1 %v1934_v13  ;;  %v1962_v32 = vld [vmem:[%s2527_s28 + $0x104] ss:$16 sps:$4 sm:$0xff]   ;;  %v1964_v33 = vld [vmem:[%s2527_s28 + $0x10c] ss:$16 sps:$4 sm:$0xff]   ;;  %v1966_v34 = vld [vmem:[%s2527_s28 + $0x100] ss:$16 sps:$4 sm:$0xff]  }
  0x86   : > { %v1967_v35 = vld [vmem:[%s2527_s28 + $0x108] ss:$16 sps:$4 sm:$0xff]   ;;  %v1968_v36 = vld [vmem:[%s2527_s28 + $0x124] ss:$16 sps:$4 sm:$0xff]   ;;  %v1970_v37 = vld [vmem:[%s2527_s28 + $0x12c] ss:$16 sps:$4 sm:$0xff]  }
  0x87   : > { %v1972_v38 = vld [vmem:[%s2527_s28 + $0x120] ss:$16 sps:$4 sm:$0xff]   ;;  %v1973_v39 = vld [vmem:[%s2527_s28 + $0x128] ss:$16 sps:$4 sm:$0xff]   ;;  %v1974_v40 = vld [vmem:[%s2527_s28 + $0x144] ss:$16 sps:$4 sm:$0xff]  }
  0x88   : > { %1144 = vmatpush1.bf16.msra.mxu0 %v1936_v14  ;;  %1250 = vmatpush1.bf16.msra.mxu1 %v1937_v15  ;;  %v1976_v41 = vld [vmem:[%s2527_s28 + $0x14c] ss:$16 sps:$4 sm:$0xff]   ;;  %v1978_v42 = vld [vmem:[%s2527_s28 + $0x140] ss:$16 sps:$4 sm:$0xff]   ;;  %v1979_v43 = vld [vmem:[%s2527_s28 + $0x148] ss:$16 sps:$4 sm:$0xff]  }
  0x89   : > { %1145 = vmatprep.subr.bf16.mxu0 %v1938_v16  ;;  %1251 = vmatprep.subr.bf16.mxu1 %v1940_v17  ;;  %v1980_v44 = vld [vmem:[%s2527_s28 + $0x164] ss:$16 sps:$4 sm:$0xff]   ;;  %v1982_v45 = vld [vmem:[%s2527_s28 + $0x16c] ss:$16 sps:$4 sm:$0xff]   ;;  %v1984_v46 = vld [vmem:[%s2527_s28 + $0x160] ss:$16 sps:$4 sm:$0xff]  }
  0x8a   : > { %v1985_v47 = vld [vmem:[%s2527_s28 + $0x168] ss:$16 sps:$4 sm:$0xff]   ;;  %v2012_v48 = vld [vmem:[#allocation3 + $0x4] ss:$16 sps:$4 sm:$0xff]   ;;  %v1988_v50 = vld [vmem:[%s2527_s28 + $0x18c] ss:$16 sps:$4 sm:$0xff]  }
  0x8b   : > { %v1986_v49 = vld [vmem:[%s2527_s28 + $0x184] ss:$16 sps:$4 sm:$0xff]   ;;  %1169 = vmatprep.mubr.bf16.mxu0 %v2012_v48  ;;  %1275 = vmatprep.mubr.bf16.mxu1 %v2012_v48  ;;  %v1990_v51 = vld [vmem:[%s2527_s28 + $0x180] ss:$16 sps:$4 sm:$0xff]   ;;  %v1991_v52 = vld [vmem:[%s2527_s28 + $0x188] ss:$16 sps:$4 sm:$0xff]  }
  0x8c   : > { %1146 = vmatpush1.bf16.msra.mxu0 %v1942_v18  ;;  %1252 = vmatpush1.bf16.msra.mxu1 %v1943_v19  ;;  %v1992_v53 = vld [vmem:[%s2527_s28 + $0x1a4] ss:$16 sps:$4 sm:$0xff]   ;;  %v1994_v54 = vld [vmem:[%s2527_s28 + $0x1ac] ss:$16 sps:$4 sm:$0xff]   ;;  %v1996_v55 = vld [vmem:[%s2527_s28 + $0x1a0] ss:$16 sps:$4 sm:$0xff]  }
  0x8d   : > { %1147 = vmatprep.subr.bf16.mxu0 %v1944_v20  ;;  %1253 = vmatprep.subr.bf16.mxu1 %v1946_v21  ;;  %v1997_v56 = vld [vmem:[%s2527_s28 + $0x1a8] ss:$16 sps:$4 sm:$0xff]   ;;  %v1998_v57 = vld [vmem:[%s2527_s28 + $0x1c4] ss:$16 sps:$4 sm:$0xff]   ;;  %v2000_v58 = vld [vmem:[%s2527_s28 + $0x1cc] ss:$16 sps:$4 sm:$0xff]  }
  0x8e   : > { %v2002_v59 = vld [vmem:[%s2527_s28 + $0x1c0] ss:$16 sps:$4 sm:$0xff]   ;;  %v2003_v60 = vld [vmem:[%s2527_s28 + $0x1c8] ss:$16 sps:$4 sm:$0xff]   ;;  %v2004_v61 = vld [vmem:[%s2527_s28 + $0x1e4] ss:$16 sps:$4 sm:$0xff]  }
  0x8f   : > { %v2006_v62 = vld [vmem:[%s2527_s28 + $0x1ec] ss:$16 sps:$4 sm:$0xff]   ;;  %v2008_v63 = vld [vmem:[%s2527_s28 + $0x1e0] ss:$16 sps:$4 sm:$0xff]   ;;  %v2009_v0 = vld [vmem:[%s2527_s28 + $0x1e8] ss:$16 sps:$4 sm:$0xff]  }
  0x90   : > { %1148 = vmatpush1.bf16.msra.mxu0 %v1948_v22  ;;  %1254 = vmatpush1.bf16.msra.mxu1 %v1949_v23  ;;  %v2015_v1 = vld [vmem:[%s2527_s28 + $0x204] ss:$16 sps:$4 sm:$0xff]   ;;  %v2018_v2 = vld [vmem:[%s2527_s28 + $0x20c] ss:$16 sps:$4 sm:$0xff]   ;;  %v2010_v3 = vld [vmem:[#allocation3] ss:$16 sps:$4 sm:$0xff]  }
  0x91   : > { %1149 = vmatprep.subr.bf16.mxu0 %v1950_v24  ;;  %1255 = vmatprep.subr.bf16.mxu1 %v1952_v25  ;;  %v2013_v4 = vld [vmem:[%s2527_s28 + $0x200] ss:$16 sps:$4 sm:$0xff]   ;;  %v2016_v5 = vld [vmem:[%s2527_s28 + $0x208] ss:$16 sps:$4 sm:$0xff]   ;;  %v2021_v6 = vld [vmem:[%s2527_s28 + $0x224] ss:$16 sps:$4 sm:$0xff]  }
  0x92   : > { %v2024_v7 = vld [vmem:[%s2527_s28 + $0x22c] ss:$16 sps:$4 sm:$0xff]   ;;  %v2019_v8 = vld [vmem:[%s2527_s28 + $0x220] ss:$16 sps:$4 sm:$0xff]   ;;  %v2022_v9 = vld [vmem:[%s2527_s28 + $0x228] ss:$16 sps:$4 sm:$0xff]  }
  0x93   : > { %v2027_v10 = vld [vmem:[%s2527_s28 + $0x244] ss:$16 sps:$4 sm:$0xff]   ;;  %v2030_v11 = vld [vmem:[%s2527_s28 + $0x24c] ss:$16 sps:$4 sm:$0xff]   ;;  %v2025_v12 = vld [vmem:[%s2527_s28 + $0x240] ss:$16 sps:$4 sm:$0xff]  }
  0x94   : > { %1150 = vmatpush1.bf16.msra.mxu0 %v1954_v26  ;;  %1256 = vmatpush1.bf16.msra.mxu1 %v1955_v27  ;;  %v2028_v13 = vld [vmem:[%s2527_s28 + $0x248] ss:$16 sps:$4 sm:$0xff]   ;;  %v2033_v14 = vld [vmem:[%s2527_s28 + $0x264] ss:$16 sps:$4 sm:$0xff]   ;;  %v2036_v15 = vld [vmem:[%s2527_s28 + $0x26c] ss:$16 sps:$4 sm:$0xff]  }
  0x95   : > { %1151 = vmatprep.subr.bf16.mxu0 %v1956_v28  ;;  %1257 = vmatprep.subr.bf16.mxu1 %v1958_v29  ;;  %v2031_v16 = vld [vmem:[%s2527_s28 + $0x260] ss:$16 sps:$4 sm:$0xff]   ;;  %v2034_v17 = vld [vmem:[%s2527_s28 + $0x268] ss:$16 sps:$4 sm:$0xff]   ;;  %v2039_v18 = vld [vmem:[%s2527_s28 + $0x284] ss:$16 sps:$4 sm:$0xff]  }
  0x96   : > { %v2042_v19 = vld [vmem:[%s2527_s28 + $0x28c] ss:$16 sps:$4 sm:$0xff]   ;;  %v2037_v20 = vld [vmem:[%s2527_s28 + $0x280] ss:$16 sps:$4 sm:$0xff]   ;;  %v2040_v21 = vld [vmem:[%s2527_s28 + $0x288] ss:$16 sps:$4 sm:$0xff]  }
  0x97   : > { %v2045_v22 = vld [vmem:[%s2527_s28 + $0x2a4] ss:$16 sps:$4 sm:$0xff]   ;;  %v2048_v23 = vld [vmem:[%s2527_s28 + $0x2ac] ss:$16 sps:$4 sm:$0xff]   ;;  %v2043_v24 = vld [vmem:[%s2527_s28 + $0x2a0] ss:$16 sps:$4 sm:$0xff]  }
  0x98   : > { %1152 = vmatpush1.bf16.msra.mxu0 %v1960_v30  ;;  %1258 = vmatpush1.bf16.msra.mxu1 %v1961_v31  ;;  %v2097_v25 = vld [vmem:[#allocation3 + $0x24] ss:$16 sps:$4 sm:$0xff]   ;;  %v2046_v26 = vld [vmem:[%s2527_s28 + $0x2a8] ss:$16 sps:$4 sm:$0xff]   ;;  %v2099_v27 = vld [vmem:[#allocation3 + $0x20] ss:$16 sps:$4 sm:$0xff]  }
  0x99   : > { %1153 = vmatprep.subr.bf16.mxu0 %v1962_v32  ;;  %1259 = vmatprep.subr.bf16.mxu1 %v1964_v33  ;;  %v2051_v28 = vld [vmem:[%s2527_s28 + $0x2c4] ss:$16 sps:$4 sm:$0xff]   ;;  %v2054_v29 = vld [vmem:[%s2527_s28 + $0x2cc] ss:$16 sps:$4 sm:$0xff]   ;;  %v2049_v30 = vld [vmem:[%s2527_s28 + $0x2c0] ss:$16 sps:$4 sm:$0xff]  }
  0x9a   : > { %v2052_v31 = vld [vmem:[%s2527_s28 + $0x2c8] ss:$16 sps:$4 sm:$0xff]   ;;  %v2057_v32 = vld [vmem:[%s2527_s28 + $0x2e4] ss:$16 sps:$4 sm:$0xff]   ;;  %v2060_v33 = vld [vmem:[%s2527_s28 + $0x2ec] ss:$16 sps:$4 sm:$0xff]  }
  0x9b   : > { %v2076_v48 = vld [vmem:[%s2527_s28 + $0x348] ss:$16 sps:$4 sm:$0xff]   ;;  %s250_s8 = scalar_lea.vmem [#allocation8], %s1652_s30  ;;  %s1653_s10 = sshll.u32 %s2524_s20, 6 }
  0x9c   : > { %1154 = vmatpush1.bf16.msra.mxu0 %v1966_v34  ;;  %1260 = vmatpush1.bf16.msra.mxu1 %v1967_v35  ;;  %v2114_v34 = vld [vmem:[#allocation3 + $0xc] ss:$16 sps:$4 sm:$0xff]   ;;  %v2055_v35 = vld [vmem:[%s2527_s28 + $0x2e0] ss:$16 sps:$4 sm:$0xff]   ;;  %s2663_s19 = scalar_lea.vmem [#allocation9], %s1653_s10  ;;  %s1813_s22 = sshll.u32 %s2284_s15, 8 }
  0x9d   : > { %1155 = vmatprep.subr.bf16.mxu0 %v1968_v36  ;;  %1261 = vmatprep.subr.bf16.mxu1 %v1970_v37  ;;  %v2058_v36 = vld [vmem:[%s2527_s28 + $0x2e8] ss:$16 sps:$4 sm:$0xff]   ;;  %v2063_v37 = vld [vmem:[%s2527_s28 + $0x304] ss:$16 sps:$4 sm:$0xff]   ;;  %s1511_s11 = sshll.u32 %s2663_s19, 4  ;;  %s2676_s5 = scalar_lea.hbm %s2732_s3, %s1813_s22  ;;  %s2671_s11 = int_to_ptr.vmem [resolvable:$true] %s1511_s11 }
  0x9e   : > { %s1495_s15 = scalar_lea.sflag [#allocation5], %s2524_s20  ;;  %s2206_s1 = scalar_lea.vmem %s2671_s11, 1024 }
  0x9f   : > { %p2207_p10 = scmp.ne.s32.totalorder %s2671_s11, %s2206_s1  ;;  %p2756_p13 = scmp.ne.s32.totalorder %s2745_s29, 0 }
  0xa0   : > { %1156 = vmatpush1.bf16.msra.mxu0 %v1972_v38  ;;  %1262 = vmatpush1.bf16.msra.mxu1 %v1973_v39  ;;  %v2066_v38 = vld [vmem:[%s2527_s28 + $0x30c] ss:$16 sps:$4 sm:$0xff]   ;;  %v2061_v39 = vld [vmem:[%s2527_s28 + $0x300] ss:$16 sps:$4 sm:$0xff]   ;;  %s2300_s6 = smov [#allocation9]  }
  0xa1   : > { %1157 = vmatprep.subr.bf16.mxu0 %v1974_v40  ;;  %1263 = vmatprep.subr.bf16.mxu1 %v1976_v41  ;;  %v2064_v40 = vld [vmem:[%s2527_s28 + $0x308] ss:$16 sps:$4 sm:$0xff]   ;;  %v2069_v41 = vld [vmem:[%s2527_s28 + $0x324] ss:$16 sps:$4 sm:$0xff]   ;;  %p2208_p0 = pnand %p2207_p10, %p2756_p13  ;;  %s2210_s25 = sshll.u32 %s2300_s6, 4  ;;  %s2211_s25 = int_to_ptr.vmem [resolvable:$false] %s2210_s25 }
  0xa2   : > { %s2212_s26 = scalar_lea.vmem %s2211_s25, 2048  ;;  %p2213_p3 = scmp.lt.s32.totalorder %s2671_s11, %s2211_s25 }
  0xa3   : > { %p2209_p7 = pneg %p2208_p0  ;;  %p2214_p1 = scmp.lt.s32.totalorder %s2212_s26, %s2206_s1 }
  0xa4   : > { %1158 = vmatpush1.bf16.msra.mxu0 %v1978_v42  ;;  %1264 = vmatpush1.bf16.msra.mxu1 %v1979_v43  ;;  %v2072_v42 = vld [vmem:[%s2527_s28 + $0x32c] ss:$16 sps:$4 sm:$0xff]   ;;  %v2067_v43 = vld [vmem:[%s2527_s28 + $0x320] ss:$16 sps:$4 sm:$0xff]  }
  0xa5   : > { %1159 = vmatprep.subr.bf16.mxu0 %v1980_v44  ;;  %1265 = vmatprep.subr.bf16.mxu1 %v1982_v45  ;;  %v2070_v44 = vld [vmem:[%s2527_s28 + $0x328] ss:$16 sps:$4 sm:$0xff]   ;;  %v2075_v45 = vld [vmem:[%s2527_s28 + $0x344] ss:$16 sps:$4 sm:$0xff]   ;;  %p2215_p4 = por %p2214_p1, %p2213_p3 }
  0xa7   : > { %p2216_p2 = pnand %p2215_p4, %p2209_p7 }
  0xa8   : > { %1160 = vmatpush1.bf16.msra.mxu0 %v1984_v46  ;;  %1266 = vmatpush1.bf16.msra.mxu1 %v1985_v47  ;;  %v2078_v46 = vld [vmem:[%s2527_s28 + $0x34c] ss:$16 sps:$4 sm:$0xff]   ;;  %v2073_v47 = vld [vmem:[%s2527_s28 + $0x340] ss:$16 sps:$4 sm:$0xff]  }
  0xa9   : > { %1161 = vmatprep.subr.bf16.mxu0 %v1986_v49  ;;  %1267 = vmatprep.subr.bf16.mxu1 %v1988_v50  ;;  %v2081_v49 = vld [vmem:[%s2527_s28 + $0x364] ss:$16 sps:$4 sm:$0xff]   ;;  %v2084_v50 = vld [vmem:[%s2527_s28 + $0x36c] ss:$16 sps:$4 sm:$0xff]  }
  0xac   : > { %1162 = vmatpush1.bf16.msra.mxu0 %v1990_v51  ;;  %1268 = vmatpush1.bf16.msra.mxu1 %v1991_v52  ;;  %v2079_v51 = vld [vmem:[%s2527_s28 + $0x360] ss:$16 sps:$4 sm:$0xff]   ;;  %v2082_v52 = vld [vmem:[%s2527_s28 + $0x368] ss:$16 sps:$4 sm:$0xff]  }
  0xad   : > { %1163 = vmatprep.subr.bf16.mxu0 %v1992_v53  ;;  %1269 = vmatprep.subr.bf16.mxu1 %v1994_v54  ;;  %v2087_v53 = vld [vmem:[%s2527_s28 + $0x384] ss:$16 sps:$4 sm:$0xff]   ;;  %v2090_v54 = vld [vmem:[%s2527_s28 + $0x38c] ss:$16 sps:$4 sm:$0xff]  }
  0xb0   : > { %1164 = vmatpush1.bf16.msra.mxu0 %v1996_v55  ;;  %1270 = vmatpush1.bf16.msra.mxu1 %v1997_v56  ;;  %v2085_v55 = vld [vmem:[%s2527_s28 + $0x380] ss:$16 sps:$4 sm:$0xff]   ;;  %v2088_v56 = vld [vmem:[%s2527_s28 + $0x388] ss:$16 sps:$4 sm:$0xff]  }
  0xb1   : > { %1165 = vmatprep.subr.bf16.mxu0 %v1998_v57  ;;  %1271 = vmatprep.subr.bf16.mxu1 %v2000_v58  ;;  %v2093_v57 = vld [vmem:[%s2527_s28 + $0x3a4] ss:$16 sps:$4 sm:$0xff]   ;;  %v2096_v58 = vld [vmem:[%s2527_s28 + $0x3ac] ss:$16 sps:$4 sm:$0xff]  }
  0xb4   : > { %1166 = vmatpush1.bf16.msra.mxu0 %v2002_v59  ;;  %1272 = vmatpush1.bf16.msra.mxu1 %v2003_v60  ;;  %v2091_v59 = vld [vmem:[%s2527_s28 + $0x3a0] ss:$16 sps:$4 sm:$0xff]   ;;  %v2094_v60 = vld [vmem:[%s2527_s28 + $0x3a8] ss:$16 sps:$4 sm:$0xff]  }
  0xb5   : > { %1167 = vmatprep.subr.bf16.mxu0 %v2004_v61  ;;  %1273 = vmatprep.subr.bf16.mxu1 %v2006_v62  ;;  %v2102_v61 = vld [vmem:[%s2527_s28 + $0x3c4] ss:$16 sps:$4 sm:$0xff]   ;;  %v2105_v62 = vld [vmem:[%s2527_s28 + $0x3cc] ss:$16 sps:$4 sm:$0xff]  }
  0xb8   : > { %1168 = vmatpush1.bf16.msra.mxu0 %v2008_v63  ;;  %1274 = vmatpush1.bf16.msra.mxu1 %v2009_v0  ;;  %v2100_v63 = vld [vmem:[%s2527_s28 + $0x3c0] ss:$16 sps:$4 sm:$0xff]   ;;  %v2103_v0 = vld [vmem:[%s2527_s28 + $0x3c8] ss:$16 sps:$4 sm:$0xff]  }
  0xb9   : > { %1190 = vmatprep.subr.bf16.mxu0 %v2015_v1  ;;  %1296 = vmatprep.subr.bf16.mxu1 %v2018_v2  ;;  %v2108_v1 = vld [vmem:[%s2527_s28 + $0x3e4] ss:$16 sps:$4 sm:$0xff]   ;;  %v2111_v2 = vld [vmem:[%s2527_s28 + $0x3ec] ss:$16 sps:$4 sm:$0xff]  }
  0xbb   : > { %1170 = vmatmul.mubr.bf16.vlgmr.msra.gmra.mrb[0].mxu0 %v2010_v3  ;;  %1276 = vmatmul.mubr.bf16.vlgmr.msra.gmra.mrb[0].mxu1 %v2010_v3  ;;  %v2106_v3 = vld [vmem:[%s2527_s28 + $0x3e0] ss:$16 sps:$4 sm:$0xff]  }
  0xbc   : > { %1191 = vmatpush1.bf16.msra.mxu0 %v2013_v4  ;;  %1297 = vmatpush1.bf16.msra.mxu1 %v2016_v5  ;;  %v2109_v4 = vld [vmem:[%s2527_s28 + $0x3e8] ss:$16 sps:$4 sm:$0xff]  }
  0xbd   : > { %1192 = vmatprep.subr.bf16.mxu0 %v2021_v6  ;;  %1298 = vmatprep.subr.bf16.mxu1 %v2024_v7  ;;  %v2112_v5 = vld [vmem:[#allocation3 + $0x8] ss:$16 sps:$4 sm:$0xff]   ;;  %v2115_v6 = vld [vmem:[#allocation3 + $0x2c] ss:$16 sps:$4 sm:$0xff]  }
  0xbe   : > { %1179 = vmatprep.mubr.bf16.mxu0 %v2097_v25  ;;  %1285 = vmatprep.mubr.bf16.mxu1 %v2097_v25  ;;  %v2117_v7 = vld [vmem:[#allocation3 + $0x28] ss:$16 sps:$4 sm:$0xff]  }
  0xc0   : > { %1193 = vmatpush1.bf16.msra.mxu0 %v2019_v8  ;;  %1299 = vmatpush1.bf16.msra.mxu1 %v2022_v9  ;;  %v1402_v8 = vlaneseq }
  0xc1   : > { %1194 = vmatprep.subr.bf16.mxu0 %v2027_v10  ;;  %1300 = vmatprep.subr.bf16.mxu1 %v2030_v11 }
  0xc2   : > { %v1403_v9 = vshrl.u32 %v1402_v8, 7 }
  0xc3   : > { %1180 = vmatmul.mubr.bf16.gmra.mrb[4].mxu0 %v2099_v27  ;;  %1286 = vmatmul.mubr.bf16.gmra.mrb[4].mxu1 %v2099_v27 }
  0xc4   : > { %1195 = vmatpush1.bf16.msra.mxu0 %v2025_v12  ;;  %1301 = vmatpush1.bf16.msra.mxu1 %v2028_v13  ;;  %v1404_v10 = vsub.s32 0, %v1403_v9  ;;  %v1412_v11 = vsub.s32 2, %v1403_v9  ;;  %v1400_v12 = vld [vmem:[%s250_s8] sm:$0xf]  ;;  %v1408_v13 = vsub.s32 1, %v1403_v9 }
  0xc5   : > { %1196 = vmatprep.subr.bf16.mxu0 %v2033_v14  ;;  %1302 = vmatprep.subr.bf16.mxu1 %v2036_v15  ;;  %v1416_v14 = vsub.s32 3, %v1403_v9 }
  0xc6   : > { %1222 = vmatprep.mubr.bf16.mxu0 %v2114_v34  ;;  %1328 = vmatprep.mubr.bf16.mxu1 %v2114_v34  ;;  %v1405_v15 = vrot.slane %v1400_v12, %v1404_v10 }
  0xc8   : > { %1197 = vmatpush1.bf16.msra.mxu0 %v2031_v16  ;;  %1303 = vmatpush1.bf16.msra.mxu1 %v2034_v17  ;;  %v1413_v16 = vrot.slane %v1400_v12, %v1412_v11  ;;  %v1409_v17 = vrot.slane %v1400_v12, %v1408_v13 }
  0xc9   : > { %1198 = vmatprep.subr.bf16.mxu0 %v2039_v18  ;;  %1304 = vmatprep.subr.bf16.mxu1 %v2042_v19  ;;  %v1417_v18 = vrot.slane %v1400_v12, %v1416_v14 }
  0xcc   : > { %1199 = vmatpush1.bf16.msra.mxu0 %v2037_v20  ;;  %1305 = vmatpush1.bf16.msra.mxu1 %v2040_v21 }
  0xcd   : > { %1200 = vmatprep.subr.bf16.mxu0 %v2045_v22  ;;  %1306 = vmatprep.subr.bf16.mxu1 %v2048_v23 }
  0xd0   : > { %1201 = vmatpush1.bf16.msra.mxu0 %v2043_v24  ;;  %1307 = vmatpush1.bf16.msra.mxu1 %v2046_v26 }
  0xd1   : > { %1202 = vmatprep.subr.bf16.mxu0 %v2051_v28  ;;  %1308 = vmatprep.subr.bf16.mxu1 %v2054_v29 }
  0xd4   : > { %1203 = vmatpush1.bf16.msra.mxu0 %v2049_v30  ;;  %1309 = vmatpush1.bf16.msra.mxu1 %v2052_v31 }
  0xd5   : > { %1204 = vmatprep.subr.bf16.mxu0 %v2057_v32  ;;  %1310 = vmatprep.subr.bf16.mxu1 %v2060_v33 }
  0xd8   : > { %1205 = vmatpush1.bf16.msra.mxu0 %v2055_v35  ;;  %1311 = vmatpush1.bf16.msra.mxu1 %v2058_v36 }
  0xd9   : > { %1206 = vmatprep.subr.bf16.mxu0 %v2063_v37  ;;  %1312 = vmatprep.subr.bf16.mxu1 %v2066_v38 }
  0xdc   : > { %1207 = vmatpush1.bf16.msra.mxu0 %v2061_v39  ;;  %1313 = vmatpush1.bf16.msra.mxu1 %v2064_v40 }
  0xdd   : > { %1208 = vmatprep.subr.bf16.mxu0 %v2069_v41  ;;  %1314 = vmatprep.subr.bf16.mxu1 %v2072_v42 }
  0xe0   : > { %1209 = vmatpush1.bf16.msra.mxu0 %v2067_v43  ;;  %1315 = vmatpush1.bf16.msra.mxu1 %v2070_v44 }
  0xe1   : > { %1210 = vmatprep.subr.bf16.mxu0 %v2075_v45  ;;  %1316 = vmatprep.subr.bf16.mxu1 %v2078_v46 }
  0xe4   : > { %1211 = vmatpush1.bf16.msra.mxu0 %v2073_v47  ;;  %1317 = vmatpush1.bf16.msra.mxu1 %v2076_v48 }
  0xe5   : > { %1212 = vmatprep.subr.bf16.mxu0 %v2081_v49  ;;  %1318 = vmatprep.subr.bf16.mxu1 %v2084_v50 }
  0xe8   : > { %1213 = vmatpush1.bf16.msra.mxu0 %v2079_v51  ;;  %1319 = vmatpush1.bf16.msra.mxu1 %v2082_v52 }
  0xe9   : > { %1214 = vmatprep.subr.bf16.mxu0 %v2087_v53  ;;  %1320 = vmatprep.subr.bf16.mxu1 %v2090_v54 }
  0xec   : > { %1215 = vmatpush1.bf16.msra.mxu0 %v2085_v55  ;;  %1321 = vmatpush1.bf16.msra.mxu1 %v2088_v56 }
  0xed   : > { %1216 = vmatprep.subr.bf16.mxu0 %v2093_v57  ;;  %1322 = vmatprep.subr.bf16.mxu1 %v2096_v58 }
  0xf0   : > { %1217 = vmatpush1.bf16.msra.mxu0 %v2091_v59  ;;  %1323 = vmatpush1.bf16.msra.mxu1 %v2094_v60 }
  0xf1   : > { %1218 = vmatprep.subr.bf16.mxu0 %v2102_v61  ;;  %1324 = vmatprep.subr.bf16.mxu1 %v2105_v62 }
  0xf4   : > { %1219 = vmatpush1.bf16.msra.mxu0 %v2100_v63  ;;  %1325 = vmatpush1.bf16.msra.mxu1 %v2103_v0 }
  0xf5   : > { %1220 = vmatprep.subr.bf16.mxu0 %v2108_v1  ;;  %1326 = vmatprep.subr.bf16.mxu1 %v2111_v2 }
  0xf8   : > { %1221 = vmatpush1.bf16.msra.mxu0 %v2106_v3  ;;  %1327 = vmatpush1.bf16.msra.mxu1 %v2109_v4 }
  0xfb   : > { %1223 = vmatmul.mubr.bf16.vlgmr.msra.gmra.mrb[0].mxu0 %v2112_v5  ;;  %1329 = vmatmul.mubr.bf16.vlgmr.msra.gmra.mrb[0].mxu1 %v2112_v5 }
  0xfc   : > { %1232 = vmatprep.mubr.bf16.mxu0 %v2115_v6  ;;  %1338 = vmatprep.mubr.bf16.mxu1 %v2115_v6 }
 0x103   : > { %1233 = vmatmul.mubr.bf16.gmra.mrb[4].mxu0 %v2117_v7  ;;  %1339 = vmatmul.mubr.bf16.gmra.mrb[4].mxu1 %v2117_v7 }
 0x1ce   : > { %v1224_v19 = vpop.f32.mrb[0].mxu0  ;;  %v1330_v20 = vpop.f32.mrb[0].mxu1 }
 0x1cf   : > { %v1422_v21 = vadd.f32 %v1405_v15, %v1224_v19  ;;  %v1424_v22 = vadd.f32 %v1413_v16, %v1330_v20  ;;  %v1226_v23 = vpop.f32.mrb[1].mxu0  ;;  %v1332_v24 = vpop.f32.mrb[1].mxu1 }
 0x1d0   : > { %v1423_v25 = vadd.f32 %v1409_v17, %v1226_v23  ;;  %v1425_v26 = vadd.f32 %v1417_v18, %v1332_v24  ;;  %v1228_v27 = vpop.f32.mrb[2].mxu0  ;;  %v1334_v28 = vpop.f32.mrb[2].mxu1 }
 0x1d1   : > { %v1426_v29 = vadd.f32 %v1405_v15, %v1228_v27  ;;  %v1428_v30 = vadd.f32 %v1413_v16, %v1334_v28  ;;  %v1230_v31 = vpop.f32.mrb[3].mxu0  ;;  %v1336_v32 = vpop.f32.mrb[3].mxu1 }
 0x1d2   : > { %v1805_v33 = vpack.c.bf16 %v1423_v25, %v1422_v21  ;;  %v1806_v34 = vpack.c.bf16 %v1425_v26, %v1424_v22  ;;  %v1427_v35 = vadd.f32 %v1409_v17, %v1230_v31  ;;  %v1429_v36 = vadd.f32 %v1417_v18, %v1336_v32 }
 0x1d4   : > { %1486 = vst [vmem:[%s2663_s19] sm:$0xff] %v1805_v33  ;;  %1487 = vst [vmem:[%s2663_s19 + $0x8] sm:$0xff] %v1806_v34  ;;  %v1807_v37 = vpack.c.bf16 %v1427_v35, %v1426_v29  ;;  %v1808_v38 = vpack.c.bf16 %v1429_v36, %v1428_v30 }
 0x1d6   : > { %1488 = vst [vmem:[%s2663_s19 + $0x10] sm:$0xff] %v1807_v37  ;;  %1489 = vst [vmem:[%s2663_s19 + $0x18] sm:$0xff] %v1808_v38  ;;  %v1234_v39 = vpop.f32.mrb[4].mxu0  ;;  %v1340_v40 = vpop.f32.mrb[4].mxu1 }
 0x1d7   : > { %v1430_v41 = vadd.f32 %v1405_v15, %v1234_v39  ;;  %v1432_v42 = vadd.f32 %v1413_v16, %v1340_v40  ;;  %v1236_v43 = vpop.f32.mrb[5].mxu0  ;;  %v1342_v44 = vpop.f32.mrb[5].mxu1 }
 0x1d8   : > { %v1431_v45 = vadd.f32 %v1409_v17, %v1236_v43  ;;  %v1433_v46 = vadd.f32 %v1417_v18, %v1342_v44  ;;  %v1238_v47 = vpop.f32.mrb[6].mxu0  ;;  %v1344_v48 = vpop.f32.mrb[6].mxu1 }
 0x1d9   : > { %v1434_v49 = vadd.f32 %v1405_v15, %v1238_v47  ;;  %v1436_v50 = vadd.f32 %v1413_v16, %v1344_v48  ;;  %v1240_v51 = vpop.f32.mrb[7].mxu0  ;;  %v1346_v52 = vpop.f32.mrb[7].mxu1 }
 0x1da   : > { %v1809_v53 = vpack.c.bf16 %v1431_v45, %v1430_v41  ;;  %v1810_v54 = vpack.c.bf16 %v1433_v46, %v1432_v42  ;;  %v1435_v55 = vadd.f32 %v1409_v17, %v1240_v51  ;;  %v1437_v56 = vadd.f32 %v1417_v18, %v1346_v52 }
 0x1dc   : > { %1490 = vst [vmem:[%s2663_s19 + $0x20] sm:$0xff] %v1809_v53  ;;  %1491 = vst [vmem:[%s2663_s19 + $0x28] sm:$0xff] %v1810_v54  ;;  %v1811_v57 = vpack.c.bf16 %v1435_v55, %v1434_v49  ;;  %v1812_v58 = vpack.c.bf16 %v1437_v56, %v1436_v50 }
 0x1de   : > { %1492 = vst [vmem:[%s2663_s19 + $0x30] sm:$0xff] %v1811_v57  ;;  %1493 = vst [vmem:[%s2663_s19 + $0x38] sm:$0xff] %v1812_v58 }
 0x1df   : > { %2219 = shalt.err (!%p2216_p2)
}
 0x1e0   : > { %s2220_s7 = scalar_lea.hbm %s2676_s5, 1024  ;;  %s2224_s28 = scalar_lea.hbm %s2732_s3, 2048 }
 0x1e1   : > { %p2221_p6 = scmp.ne.s32.totalorder %s2676_s5, %s2220_s7  ;;  %p2225_p5 = scmp.lt.u32.totalorder %s2676_s5, %s2732_s3 }
 0x1e2   : > { %p2226_p8 = scmp.lt.u32.totalorder %s2224_s28, %s2220_s7  ;;  %p2228_p10 = scmp.lt.u32.totalorder %s2220_s7, %s2676_s5 }
 0x1e3   : > { %p2222_p12 = pnand %p2221_p6, %p2756_p13 }
 0x1e4   : > { %p2227_p11 = por %p2226_p8, %p2225_p5 }
 0x1e5   : > { %p2223_p9 = pneg %p2222_p12 }
 0x1e6   : > { %p2229_p0 = por %p2228_p10, %p2227_p11 }
 0x1e8   : > { %p2230_p7 = pnand %p2229_p0, %p2223_p9 }
 0x1ea   : > { %2233 = shalt.err (!%p2230_p7)
}
 0x1eb   : > { %s2301_s10 = smov 256   ;;  %s2302_s19 = smov 512  }
 0x1ec   : > { %s2303_s22 = smov 16  }
 0x1ed   : > { %1838 = dma.vmem_to_hbm [thread:$0]  (%p2756_p13), %s2671_s11, 1024, %s2676_s5, %s1495_s15, %s2301_s10, %s2302_s19, %s2303_s22  }
 0x1ee PF: > { %s1526_s9 = sand.u32 1, %s2272_s12   ;;  %p2757_p3 = scmp.ne.s32.totalorder %s2746_s4, 0 }
 0x1ef   : > { %p2758_p1 = scmp.ge.s32.totalorder %s2292_s17, 2  ;;  %s1527_s23 = scalar_lea.sflag [#allocation5], %s1526_s9 }
 0x1f1   : > { %p1852_p4 = pnand %p2758_p1, %p2757_p3 }
 0x1f3   : > { %2267 = dma.done.wait (!%p1852_p4), %s1527_s23, 1024  }
 0x1f4   : > { %2269 = vsyncadd (!%p1852_p4), %s1527_s23, 4294966272  ;;  %s20_s17 = sadd.s32 1, %s2292_s17   ;;  %s2759_s12 = smov %s2276_s13 }
 0x1f5   : > { %p17_p2 = scmp.ge.s32.totalorder %s20_s17, 4   ;;  %s2760_s13 = smov %s2280_s14 }
 0x1f6   : > { %s2761_s14 = smov %s2375_s24  ;;  %s2762_s15 = smov %s2288_s16 }
 0x1f7   : > { %s2763_s16 = smov %s2765_s18  ;;  %19 = sbr.rel (!%p17_p2) target bundleno = 9 (0x9), region = 102 }
 0x1fe   :  { %1532 = vsyncpa [#allocation4], 1 }
 0x1ff   :  { %1534 = vsyncpa [#allocation4 + $0x1], 1 }
 0x200   :  { %1535 = vsyncpa [#allocation7], 1 }
 0x201   :  { %1537 = vsyncpa [#allocation7 + $0x1], 1 }
 0x202   :  { %1538 = vsyncpa [#allocation5], 1 }
 0x203   :  { %1540 = vsyncpa [#allocation5 + $0x1], 1 }

</bundles_post_ra>
